<compile_context>
chip_gen: v5e
topology: v5e:2x2
jax: 0.10.0
libtpu: 0.0.40
codegen_flags: <defaults>
</compile_context>

<pallas_src>
import functools
from typing import NamedTuple

import jax
import jax.numpy as jnp
from jax.experimental import pallas as pl
from jax.experimental.pallas import tpu as pltpu


def _round_up(n, m):
    return ((n + m - 1) // m) * m


def _cdiv(a, b):
    return (a + b - 1) // b


# ----------------------------- kernel ---------------------------------------
def _rnn_cell_kernel(xh_ref, w_ref, b_ref, out_ref, *, h_pad, tc):
    """out[:, c0:c0+tc] = f(xh @ W[:, c0:c0+tc] + b[:, c0:c0+tc]) with
    f = tanh on hidden columns (global col < h_pad), identity on output cols."""
    c0 = pl.program_id(1) * tc
    # Single MXU pass, f32 accumulation regardless of input dtype.
    acc = jnp.dot(xh_ref[...], w_ref[...], preferred_element_type=jnp.float32)
    acc = acc + b_ref[...].astype(jnp.float32)                  # [1, tc] broadcast
    col = c0 + jax.lax.broadcasted_iota(jnp.int32, acc.shape, 1)
    out = jnp.where(col < h_pad, jnp.tanh(acc), acc)            # EUP tanh + VPU select
    out_ref[...] = out.astype(out_ref.dtype)


# ------------------------- one-time param packing ----------------------------
class PackedRNNParams(NamedTuple):
    w: jax.Array          # [c_pad, f_pad] fused weight slab, compute dtype
    b: jax.Array          # [1, f_pad] fused bias row, float32
    len_in: int
    len_h: int
    len_out: int
    c: int                # len_in + len_h
    c_pad: int            # round_up(c, 128)
    h_pad: int            # round_up(len_h, 128)
    o_pad: int            # round_up(len_out, 128)
    compute_dtype: jnp.dtype


def prepare_params(w_h, b_h, w_out, b_out, *, compute_dtype=jnp.bfloat16):
    """One-time packing (hoisted out of the per-call hot path).

    w_h:  [C, len_h], w_out: [C, len_out] pre-transposed (y = combined @ W + b),
    b_h: [len_h] or [1, len_h], b_out likewise. C = len_in + len_h.
    """
    c, len_h = w_h.shape
    c2, len_out = w_out.shape
    assert c == c2, "w_h and w_out must share the concat input dimension"
    len_in = c - len_h

    c_pad = _round_up(c, 128)
    h_pad = _round_up(len_h, 128)
    o_pad = _round_up(len_out, 128)
    f_pad = h_pad + o_pad

    w = jnp.zeros((c_pad, f_pad), dtype=compute_dtype)
    w = w.at[:c, :len_h].set(w_h.astype(compute_dtype))
    w = w.at[:c, h_pad:h_pad + len_out].set(w_out.astype(compute_dtype))

    # Bias kept in f32 (added to the f32 accumulator; negligible bytes).
    b = jnp.zeros((1, f_pad), dtype=jnp.float32)
    b = b.at[:, :len_h].set(b_h.reshape(1, -1).astype(jnp.float32))
    b = b.at[:, h_pad:h_pad + len_out].set(b_out.reshape(1, -1).astype(jnp.float32))

    return PackedRNNParams(w, b, len_in, len_h, len_out, c, c_pad, h_pad, o_pad,
                           compute_dtype)


# ------------------------------ forward --------------------------------------
def vanilla_rnn_forward(x, h, params: PackedRNNParams, *, block_b=1024):
    """x: [B, len_in], h: [B, len_h]. Returns (y, h_out) at logical shapes."""
    B, len_in = x.shape
    assert len_in == params.len_in and h.shape == (B, params.len_h)
    cd = params.compute_dtype
    out_dtype = x.dtype
    c, c_pad = params.c, params.c_pad
    h_pad, o_pad = params.h_pad, params.o_pad
    f_pad = h_pad + o_pad

    itemsize = jnp.dtype(cd).itemsize
    out_itemsize = jnp.dtype(out_dtype).itemsize
    sub = 8 * (4 // itemsize)                      # 8 for f32, 16 for bf16 packing

    # --- batch tile selection: minimise padding, >=2 tiles when B permits ----
    b_ceil = _round_up(B, sub)
    max_tb = max(sub, min(_round_up(block_b, sub), b_ceil))
    n_min = 2 if b_ceil >= 2 * sub else 1          # feed both v7x TensorCores
    n_steps = max(_cdiv(B, max_tb), n_min)
    tb = _round_up(_cdiv(B, n_steps), sub)

    # --- VMEM budgeting (double-buffered footprint, v7x 64 MiB physical) -----
    def footprint(tb_, tc_):
        return (2 * tb_ * c_pad * itemsize          # xh input tiles
                + 2 * c_pad * tc_ * itemsize        # weight block
                + 2 * 8 * tc_ * 4                   # bias row (sublane padded)
                + 2 * tb_ * tc_ * out_itemsize)     # fused output tiles

    VMEM_BUDGET = 24 << 20
    while footprint(tb, f_pad) > VMEM_BUDGET and tb > sub:
        tb = max(sub, _round_up(tb // 2, sub))

    nb = _cdiv(B, tb)
    b_padded = nb * tb

    # Single-tile batch: split 128-wide output-column blocks so the grid still
    # has >=2 parallel steps (no-op cost on single-TC v5e/v6e).
    tc = f_pad if (nb >= 2 or f_pad < 256) else 128
    nc = f_pad // tc

    vmem_limit = max(32 << 20, 2 * footprint(tb, tc) + (2 << 20))

    # --- pack x|h into one lane-dense input slab (2 cheap XLA ops) -----------
    xh = jnp.concatenate([x.astype(cd), h.astype(cd)], axis=1)
    xh = jnp.pad(xh, ((0, b_padded - B), (0, c_pad - c)))

    kernel = functools.partial(_rnn_cell_kernel, h_pad=h_pad, tc=tc)

    out_p = pl.pallas_call(
        kernel,
        out_shape=jax.ShapeDtypeStruct((b_padded, f_pad), out_dtype),
        grid=(nb, nc),
        in_specs=[
            pl.BlockSpec((tb, c_pad), lambda i, j: (i, 0)),   # packed x|h tile
            pl.BlockSpec((c_pad, tc), lambda i, j: (0, j)),   # fused weight slab
            pl.BlockSpec((1, tc), lambda i, j: (0, j)),       # fused bias row
        ],
        out_specs=pl.BlockSpec((tb, tc), lambda i, j: (i, j)),
        compiler_params=pltpu.CompilerParams(
            dimension_semantics=("parallel", "parallel"),
            vmem_limit_bytes=int(vmem_limit),
        ),
    )(xh, params.w, params.b)

    # Strip padding back to logical shapes.
    h_out = out_p[:B, :params.len_h]
    y = out_p[:B, h_pad:h_pad + params.len_out]
    return y, h_out


# ------------------------------- init ----------------------------------------
def init_params(key, len_in, len_h, len_out, dtype=jnp.float32):
    """nn.Linear-style init, weights pre-transposed to [in_features, out_features]."""
    fan_in = len_in + len_h
    bound = 1.0 / (fan_in ** 0.5)
    k1, k2, k3, k4 = jax.random.split(key, 4)
    w_h = jax.random.uniform(k1, (fan_in, len_h), dtype, -bound, bound)
    b_h = jax.random.uniform(k2, (1, len_h), dtype, -bound, bound)
    w_out = jax.random.uniform(k3, (fan_in, len_out), dtype, -bound, bound)
    b_out = jax.random.uniform(k4, (1, len_out), dtype, -bound, bound)
    return w_h, b_h, w_out, b_out


if __name__ == "__main__":
    key = jax.random.PRNGKey(0)
    B, len_in, len_h, len_out = 8, 32, 32, 16

    kx, kh, kp = jax.random.split(key, 3)
    x = jax.random.normal(kx, (B, len_in), jnp.float32)
    h = jax.random.normal(kh, (B, len_h), jnp.float32)
    w_h, b_h, w_out, b_out = init_params(kp, len_in, len_h, len_out)

    # Reference in plain JAX (f32).
    combined = jnp.concatenate([x, h], axis=1)
    y_ref = combined @ w_out + b_out
    h_ref = jnp.tanh(combined @ w_h + b_h)

    # f32 compute path (exact regime).
    p_f32 = prepare_params(w_h, b_h, w_out, b_out, compute_dtype=jnp.float32)
    y32, h32 = vanilla_rnn_forward(x, h, p_f32)
    jax.block_until_ready((y32, h32))
    assert y32.shape == (B, len_out) and h32.shape == (B, len_h)
    assert jnp.allclose(y32, y_ref, atol=1e-5), "f32 y mismatch"
    assert jnp.allclose(h32, h_ref, atol=1e-5), "f32 h_out mismatch"

    # Default bf16-input / f32-accumulate path (MXU-native on v6e/v7x).
    p_bf16 = prepare_params(w_h, b_h, w_out, b_out)        # compute_dtype=bf16
    ybf, hbf = vanilla_rnn_forward(x, h, p_bf16)
    jax.block_until_ready((ybf, hbf))
    assert ybf.shape == (B, len_out) and hbf.shape == (B, len_h)
    assert jnp.allclose(ybf, y_ref, atol=6e-2), "bf16 y mismatch"
    assert jnp.allclose(hbf, h_ref, atol=6e-2), "bf16 h_out mismatch"

    print("KERNEL_OK")
</pallas_src>

<mosaic_0001>
module attributes {stable_mosaic.version = 11 : i64} {
  func.func @_rnn_cell_kernel(%arg0: i32, %arg1: i32, %arg2: memref<8x128xf32, #tpu.memory_space<vmem>>, %arg3: memref<128x128xf32, #tpu.memory_space<vmem>>, %arg4: memref<1x128xf32, #tpu.memory_space<vmem>>, %arg5: memref<8x128xf32, #tpu.memory_space<vmem>>) attributes {dimension_semantics = [#tpu.dimension_semantics<parallel>, #tpu.dimension_semantics<parallel>], iteration_bounds = array<i64: 1, 2>, scalar_prefetch = 0 : i64, scratch_operands = 0 : i64, tpu.core_type = #tpu.core_type<tc>, window_params = [{transform_indices = @transform_0, window_bounds = array<i64: 8, 128>}, {transform_indices = @transform_1, window_bounds = array<i64: 128, 128>}, {transform_indices = @transform_2, window_bounds = array<i64: 1, 128>}, {transform_indices = @transform_3, window_bounds = array<i64: 8, 128>}]} {
    %c128_i32 = arith.constant 128 : i32
    %0 = arith.muli %arg1, %c128_i32 : i32
    %c0 = arith.constant 0 : index
    %c0_0 = arith.constant 0 : index
    %1 = vector.load %arg2[%c0, %c0_0] : memref<8x128xf32, #tpu.memory_space<vmem>>, vector<8x128xf32>
    %c0_1 = arith.constant 0 : index
    %c0_2 = arith.constant 0 : index
    %2 = vector.load %arg3[%c0_1, %c0_2] : memref<128x128xf32, #tpu.memory_space<vmem>>, vector<128x128xf32>
    %cst = arith.constant dense<0.000000e+00> : vector<8x128xf32>
    %3 = tpu.matmul %1, %2, %cst {dimension_numbers = #tpu.dot_dimension_numbers<[1], [0], [0], [1], [0, 0, 1, 1], [], []>} : vector<8x128xf32>, vector<128x128xf32>, vector<8x128xf32> -> vector<8x128xf32>
    %c0_3 = arith.constant 0 : index
    %c0_4 = arith.constant 0 : index
    %4 = vector.load %arg4[%c0_3, %c0_4] : memref<1x128xf32, #tpu.memory_space<vmem>>, vector<1x128xf32>
    %5 = vector.broadcast %4 : vector<1x128xf32> to vector<8x128xf32>
    %6 = arith.addf %3, %5 : vector<8x128xf32>
    %7 = tpu.iota {dimensions = array<i32: 1>} : vector<8x128xi32>
    %8 = vector.broadcast %0 : i32 to vector<8x128xi32>
    %9 = arith.addi %8, %7 : vector<8x128xi32>
    %c128_i32_5 = arith.constant 128 : i32
    %10 = vector.broadcast %c128_i32_5 : i32 to vector<8x128xi32>
    %11 = arith.cmpi slt, %9, %10 : vector<8x128xi32>
    %12 = math.tanh %6 : vector<8x128xf32>
    %13 = arith.select %11, %12, %6 : vector<8x128xi1>, vector<8x128xf32>
    %c0_6 = arith.constant 0 : index
    %c0_7 = arith.constant 0 : index
    %14 = vector.load %arg5[%c0_6, %c0_7] : memref<8x128xf32, #tpu.memory_space<vmem>>, vector<8x128xf32>
    tpu.vector_store %arg5[%c0_6, %c0_7], %13 {strides = array<i32>} : memref<8x128xf32, #tpu.memory_space<vmem>>, vector<8x128xf32>,
    return
  }
  func.func @transform_0(%arg0: i32, %arg1: i32) -> (i32, i32) {
    %c0_i32 = arith.constant 0 : i32
    %c0_i32_0 = arith.constant 0 : i32
    return %arg0, %c0_i32 : i32, i32
  }
  func.func @transform_1(%arg0: i32, %arg1: i32) -> (i32, i32) {
    %c0_i32 = arith.constant 0 : i32
    %c0_i32_0 = arith.constant 0 : i32
    return %c0_i32, %arg1 : i32, i32
  }
  func.func @transform_2(%arg0: i32, %arg1: i32) -> (i32, i32) {
    %c0_i32 = arith.constant 0 : i32
    %c0_i32_0 = arith.constant 0 : i32
    return %c0_i32, %arg1 : i32, i32
  }
  func.func @transform_3(%arg0: i32, %arg1: i32) -> (i32, i32) {
    %c0_i32 = arith.constant 0 : i32
    return %arg0, %arg1 : i32, i32
  }
}

</mosaic_0001>

<bundles_post_ra>
// kernel: tpu_custom_call.1
= control target key start
LH: loop header
LB: loop body
LE: loop exit
PB: predicated region body
PF: predicated region fallthrough
CT: control target
= control target key end

     0   :  { %8 = vsyncpa [#allocation3], 0  ;;  %s933_s0 = inlined_call_operand.hbm [shape: f32[8,128], index: 0, kind: input, shape index: {}]   ;;  %s934_s1 = inlined_call_operand.hbm [shape: f32[128,256], index: 1, kind: input, shape index: {}]   ;;  %s935_s2 = inlined_call_operand.hbm [shape: f32[1,256], index: 2, kind: input, shape index: {}]   ;;  %s936_s3 = inlined_call_operand.hbm [shape: f32[8,256], index: 3, kind: output, shape index: {}]  }
   0x1   :  { %9 = vsyncpa [#allocation6], 0 }
   0x2   :  { %11 = vsyncpa [#allocation6 + $0x1], 0 }
   0x3   :  { %12 = vsyncpa [#allocation4], 0 }
   0x4   :  { %14 = vsyncpa [#allocation4 + $0x1], 0  ;;  %s738_s12 = smov 0   ;;  %s740_s13 = smov 0  }
   0x5   :  { %s742_s14 = smov 0   ;;  %s744_s15 = smov 0  }
   0x6   :  { %s746_s16 = smov 0   ;;  %s748_s17 = smov 0  }
   0x7 LB: > { %s29_s18 = sadd.s32 1, %s708_s16  ;;  %s65_s19 = sadd.s32 1, %s700_s14  ;;  %s712_s17 = sphi %s748_s17, %s20_s17   ;;  %s708_s16 = sphi %s746_s16, %s947_s16   ;;  %s704_s15 = sphi %s744_s15, %s946_s15   ;;  %s700_s14 = sphi %s742_s14, %s945_s14   ;;  %s696_s13 = sphi %s740_s13, %s944_s13   ;;  %s692_s12 = sphi %s738_s12, %s943_s12  }
   0x8   : > { %p30_p0 = scmp.ge.s32.totalorder %s29_s18, 2  ;;  %p72_p1 = scmp.ne.s32.totalorder %s700_s14, %s696_s13 }
   0x9   : > { %p73_p2 = scmp.eq.s32.totalorder %s712_s17, 0  ;;  %p440_p3 = scmp.ge.s32.totalorder %s712_s17, 2 }
   0xa   : > { %s949_s18 = smov (%p30_p0, %s29_s18), 0  ;;  %p478_p5 = scmp.lt.s32.totalorder %s712_s17, 2 }
   0xb   : > { %p779_p4 = por %p73_p2, %p72_p1  ;;  %s62_s21 = ssub.s32 %s708_s16, %s949_s18 }
   0xc   : > { %s170_s22 = sand.u32 1, %s712_s17   ;;  %p63_p6 = scmp.eq.s32.totalorder %s62_s21, 0 }
   0xd   : > { %s172_s23 = sand.u32 1, %s700_s14   ;;  %s442_s24 = sshll.u32 %s708_s16, 3 }
   0xe   : > { %s790_s25 = scalar_select %p63_p6, %s700_s14, %s65_s19  }
   0xf   : > { %s441_s26 = sshll.u32 %s172_s23, 7  ;;  %s178_s29 = scalar_lea.hbm %s934_s1, %s442_s24 }
  0x10   : > { %s179_s30 = sshll.u32 %s178_s29, 4  ;;  %s174_s4 = scalar_lea.vmem [#allocation5], %s441_s26  ;;  %s180_s30 = int_to_ptr.hbm [resolvable:$true] %s179_s30 }
  0x11   : > { %s181_s5 = sshll.u32 %s174_s4, 4  ;;  %p801_p7 = pnand %p478_p5, %p779_p4  ;;  %s182_s5 = int_to_ptr.vmem [resolvable:$true] %s181_s5 }
  0x12   : > { %s805_s7 = scalar_lea.sflag [#allocation6], %s170_s22  ;;  %s714_s8 = smov 256  }
  0x13   : > { %s715_s9 = smov 128   ;;  %s716_s10 = smov 8  }
  0x14   : > { %469 = dma.hbm_to_vmem [thread:$0]  (!%p801_p7), %s180_s30, 2048, %s182_s5, %s805_s7, %s714_s8, %s715_s9, %s716_s10  }
  0x15   : > { %s811_s11 = sadd.s32 4294967295, %s712_s17   ;;  %s437_s19 = sadd.s32 4294967294, %s712_s17  }
  0x16   : > { %p78_p8 = scmp.ne.s32.totalorder %s696_s13, %s692_s12  ;;  %p79_p9 = scmp.eq.s32.totalorder %s811_s11, 0 }
  0x17   : > { %p130_p10 = scmp.eq.s32.totalorder %s811_s11, 1  ;;  %p136_p11 = scmp.eq.s32.totalorder %s437_s19, 1 }
  0x18   : > { %p820_p12 = por %p79_p9, %p78_p8  ;;  %p438_p13 = scmp.ge.s32.totalorder %s712_s17, 1 }
  0x19   : > { %p828_p0 = por %p130_p10, %p72_p1  ;;  %p832_p2 = por %p136_p11, %p78_p8 }
  0x1a   : > { %p143_p4 = scmp.lt.s32.totalorder %s712_s17, 3  ;;  %s157_s27 = sshll.u32 %s933_s0, 4  ;;  %s158_s27 = int_to_ptr.hbm [resolvable:$true] %s157_s27 }
  0x1b   : > { %s717_s29 = smov [#allocation2]   ;;  %s197_s8 = scalar_lea.hbm %s935_s2, %s708_s16 }
  0x1c   : > { %p840_p5 = pnand %p438_p13, %p143_p4  ;;  %s159_s30 = sshll.u32 %s717_s29, 4  ;;  %s160_s30 = int_to_ptr.vmem [resolvable:$true] %s159_s30 }
  0x1d   : > { %s194_s9 = scalar_lea.vmem [#allocation7], %s172_s23  ;;  %s199_s19 = sshll.u32 %s197_s8, 4  ;;  %s200_s19 = int_to_ptr.hbm [resolvable:$true] %s199_s19 }
  0x1e   : > { %p462_p1 = pneg %p840_p5  ;;  %s201_s10 = sshll.u32 %s194_s9, 4  ;;  %s202_s10 = int_to_ptr.vmem [resolvable:$true] %s201_s10 }
  0x1f   : > { %472 = dma.hbm_to_vmem [thread:$0]  (!%p801_p7), %s200_s19, 16, %s202_s10, %s805_s7  }
  0x20   : > { %p463_p6 = pnand %p462_p1, %p79_p9  ;;  %210 = sbr.rel (%p840_p5) target bundleno = 213 (0xd5), region = 32 }
  0x22   : > { %465 = dma.hbm_to_vmem [thread:$0]  (!%p463_p6), %s158_s27, 128, %s160_s30, [#allocation3]  }
  0x25   : > { %679 = dma.done.wait (%p79_p9), [#allocation3], 128  }
  0x26   : > { %681 = vsyncadd (%p79_p9), [#allocation3], 4294967168  ;;  %s217_s23 = sand.u32 1, %s811_s11   ;;  %s865_s24 = sand.u32 1, %s696_s13  }
  0x27   : > { %s445_s26 = sshll.u32 %s865_s24, 7  ;;  %s218_s27 = scalar_lea.sflag [#allocation6], %s217_s23 }
  0x28   : > { %s868_s6 = scalar_lea.vmem [#allocation5], %s445_s26 }
  0x29   : > { %683 = dma.done.wait (%p820_p12), %s218_s27, 2064  }
  0x2a   : > { %685 = vsyncadd (%p820_p12), %s218_s27, 4294965232  ;;  %v275_v0 = vld [vmem:[%s868_s6 + $0x78] sm:$0xff]  ;;  %v274_v1 = vld [vmem:[%s868_s6 + $0x70] sm:$0xff]  ;;  %s230_s7 = scalar_lea.vmem [#allocation7], %s865_s24  ;;  %v300_v17 = vlaneseq  ;;  %s447_s11 = sshll.u32 %s704_s15, 7 }
  0x2b   : > { %280 = vmatpush.msra.mxu0 %v275_v0  ;;  %v273_v2 = vld [vmem:[%s868_s6 + $0x68] sm:$0xff]  ;;  %v272_v3 = vld [vmem:[%s868_s6 + $0x60] sm:$0xff]  ;;  %v271_v4 = vld [vmem:[%s868_s6 + $0x58] sm:$0xff]  ;;  %v302_v21 = vstv %s447_s11  ;;  %s446_s20 = sshll.u32 %s865_s24, 3  ;;  %s449_s28 = sshll.u32 %s704_s15, 3 }
  0x2c   : > { %v270_v5 = vld [vmem:[%s868_s6 + $0x50] sm:$0xff]  ;;  %v269_v6 = vld [vmem:[%s868_s6 + $0x48] sm:$0xff]  ;;  %v268_v7 = vld [vmem:[%s868_s6 + $0x40] sm:$0xff]  ;;  %v301_v19 = vand.u32 127, %v300_v17  ;;  %s321_s4 = scalar_lea.hbm %s936_s3, %s449_s28  ;;  %s257_s5 = scalar_lea.vmem [#allocation8], %s446_s20 }
  0x2d   : > { %281 = vmatpush.msra.mxu0 %v274_v1  ;;  %v267_v8 = vld [vmem:[%s868_s6 + $0x38] sm:$0xff]  ;;  %v266_v9 = vld [vmem:[%s868_s6 + $0x30] sm:$0xff]  ;;  %v265_v10 = vld [vmem:[%s868_s6 + $0x28] sm:$0xff]  ;;  %s323_s8 = sshll.u32 %s257_s5, 4  ;;  %s325_s9 = sshll.u32 %s321_s4, 4  ;;  %s324_s8 = int_to_ptr.vmem [resolvable:$true] %s323_s8  ;;  %s326_s9 = int_to_ptr.hbm [resolvable:$true] %s325_s9 }
  0x2e   : > { %v264_v11 = vld [vmem:[%s868_s6 + $0x20] sm:$0xff]  ;;  %v263_v12 = vld [vmem:[%s868_s6 + $0x18] sm:$0xff]  ;;  %v262_v13 = vld [vmem:[%s868_s6 + $0x10] sm:$0xff]  ;;  %v303_v23 = vadd.s32 %v302_v21, %v301_v19  ;;  %s309_s10 = scalar_lea.sflag [#allocation4], %s865_s24  ;;  %s640_s19 = sshra.s32 %s326_s9, 4  ;;  %s641_s19 = int_to_ptr.hbm [resolvable:$true] %s640_s19 }
  0x2f   : > { %282 = vmatpush.msra.mxu0 %v273_v2  ;;  %v261_v14 = vld [vmem:[%s868_s6 + $0x8] sm:$0xff]  ;;  %v260_v15 = vld [vmem:[%s868_s6] sm:$0xff]  ;;  %v259_v16 = vld [vmem:[#allocation2] sm:$0xff]  ;;  %s642_s15 = scalar_lea.hbm %s641_s19, 8  ;;  %s646_s27 = scalar_lea.hbm %s936_s3, 16 }
  0x30   : > { %v533_v18 = vld [vmem:[%s230_s7] ss:$0 sm:$0xff]  ;;  %vm304_vm0 = vcmp.lt.s32.totalorder %v303_v23, 128  ;;  %p643_p7 = scmp.ne.s32.totalorder %s641_s19, %s642_s15  ;;  %p647_p10 = scmp.lt.s32.totalorder %s641_s19, %s936_s3 }
  0x31   : > { %283 = vmatpush.msra.mxu0 %v272_v3  ;;  %p648_p11 = scmp.lt.s32.totalorder %s646_s27, %s642_s15 }
  0x32   : > { %p644_p8 = pnand %p643_p7, %p828_p0 }
  0x33   : > { %284 = vmatpush.msra.mxu0 %v271_v4  ;;  %p649_p12 = por %p648_p11, %p647_p10 }
  0x34   : > { %p645_p9 = pneg %p644_p8 }
  0x35   : > { %285 = vmatpush.msra.mxu0 %v270_v5 }
  0x36   : > { %p650_p13 = pnand %p649_p12, %p645_p9 }
  0x37   : > { %286 = vmatpush.msra.mxu0 %v269_v6 }
  0x39   : > { %287 = vmatpush.msra.mxu0 %v268_v7 }
  0x3b   : > { %288 = vmatpush.msra.mxu0 %v267_v8 }
  0x3d   : > { %289 = vmatpush.msra.mxu0 %v266_v9 }
  0x3f   : > { %290 = vmatpush.msra.mxu0 %v265_v10 }
  0x41   : > { %291 = vmatpush.msra.mxu0 %v264_v11 }
  0x43   : > { %292 = vmatpush.msra.mxu0 %v263_v12 }
  0x45   : > { %293 = vmatpush.msra.mxu0 %v262_v13 }
  0x47   : > { %294 = vmatpush.msra.mxu0 %v261_v14 }
  0x49   : > { %295 = vmatpush.msra.mxu0 %v260_v15 }
  0x4a   : > { %296 = vmatmul.f32.vlgmr.msra.gmra.mxu0 %v259_v16 }
  0xc7   : > { %v297_v20 = vpop.f32.mrf.mxu0 }
  0xc8   : > { %v298_v22 = vadd.f32 %v533_v18, %v297_v20 }
  0xca   : > { %534 = vtanh.f32 %v298_v22 }
  0xd0   : > { %v535_v24 = vpop.eup %534 }
  0xd1   : > { %v306_v25 = vsel %vm304_vm0, %v535_v24, %v298_v22 }
  0xd2   : > { %307 = vst [vmem:[%s257_s5] sm:$0xff] %v306_v25 }
  0xd3   : > { %653 = shalt.err (!%p650_p13)
}
  0xd4   : > { %460 = dma.vmem_to_hbm [thread:$0]  (%p828_p0), %s324_s8, 128, %s326_s9, %s309_s10  }
  0xd5 PF: > { %s337_s24 = sand.u32 1, %s692_s12   ;;  %p474_p4 = pnand %p440_p3, %p832_p2 }
  0xd6   : > { %s338_s11 = scalar_lea.sflag [#allocation4], %s337_s24 }
  0xd7   : > { %p475_p5 = pneg %p474_p4 }
  0xd9   : > { %687 = dma.done.wait (%p475_p5), %s338_s11, 128  }
  0xda   : > { %689 = vsyncadd (%p475_p5), %s338_s11, 4294967168  ;;  %s20_s17 = sadd.s32 1, %s712_s17   ;;  %s943_s12 = smov %s696_s13 }
  0xdb   : > { %p17_p1 = scmp.ge.s32.totalorder %s20_s17, 4   ;;  %s944_s13 = smov %s700_s14 }
  0xdc   : > { %s945_s14 = smov %s790_s25  ;;  %s946_s15 = smov %s708_s16 }
  0xdd   : > { %s947_s16 = smov %s949_s18  ;;  %19 = sbr.rel (!%p17_p1) target bundleno = 7 (0x7), region = 94 }
  0xe2   :  { %344 = vsyncpa [#allocation3], 1 }
  0xe3   :  { %346 = vsyncpa [#allocation3 + $0x1], 1 }
  0xe4   :  { %347 = vsyncpa [#allocation6], 1 }
  0xe5   :  { %349 = vsyncpa [#allocation6 + $0x1], 1 }
  0xe6   :  { %350 = vsyncpa [#allocation4], 1 }
  0xe7   :  { %352 = vsyncpa [#allocation4 + $0x1], 1 }

</bundles_post_ra>
